<compile_context>
chip_gen: v6e
topology: v6e:2x2x1
jax: 0.10.0
libtpu: 0.0.40
codegen_flags: <defaults>
</compile_context>

<pallas_src>
import functools

import jax
import jax.numpy as jnp
from jax.experimental import pallas as pl
from jax.experimental.pallas import tpu as pltpu


# ------------------------------ helpers -------------------------------------


def _gelu_tanh(x):
    # tanh-approximate GELU in f32.
    # TODO(synk): PyTorch nn.GELU default is the exact erf form; the tanh
    # approximation (max abs diff ~1e-3) is used for portable Mosaic lowering.
    c = jnp.float32(0.7978845608028654)  # sqrt(2/pi)
    return 0.5 * x * (1.0 + jnp.tanh(c * (x + 0.044715 * x * x * x)))


def _round_up(x, m):
    return (x + m - 1) // m * m


def _tile_size(dim, desired, granule):
    """Full extent if small/unaligned, else the largest granule-multiple
    divisor of `dim` that is <= desired (keeps blocks (8,128)-legal)."""
    if dim <= desired or dim % granule != 0:
        return dim
    t = (desired // granule) * granule
    while t >= granule:
        if dim % t == 0:
            return t
        t -= granule
    return dim


def _choose_m_tiling(M, tm_desired, granule):
    """Pick an M tile that is a granule multiple; pad M to tm*nb (minimal
    padding) and try to expose >=2 parallel M blocks for v7x's 2 TCs."""
    tm_desired = max(granule, _round_up(tm_desired, granule))
    nb = max(1, -(-M // tm_desired))           # number of M blocks
    if nb == 1 and M >= 2 * granule:
        nb = 2                                 # let both v7x TensorCores work
    tm = _round_up(-(-M // nb), granule)
    m_pad = tm * nb
    return tm, m_pad


# ------------------------------ Pallas kernels ------------------------------


def _fused_mlp_kernel_single(x_ref, w1_ref, b1_ref, w2_ref, b2_ref, o_ref,
                             *, activation):
    """Whole hidden dim in one block: single pass, no scratch."""
    h = jnp.dot(x_ref[...], w1_ref[...], preferred_element_type=jnp.float32)
    h = h + b1_ref[...].astype(jnp.float32)
    if activation == "gelu":
        h = _gelu_tanh(h)
    y = jnp.dot(h.astype(w2_ref.dtype), w2_ref[...],
                preferred_element_type=jnp.float32)
    o_ref[...] = (y + b2_ref[...].astype(jnp.float32)).astype(o_ref.dtype)


def _fused_mlp_kernel_acc(x_ref, w1_ref, b1_ref, w2_ref, b2_ref, o_ref,
                          acc_ref, *, activation):
    """Hidden dim tiled (grid axis 1 = reduction): accumulate fc2 partials."""
    j = pl.program_id(1)

    @pl.when(j == 0)
    def _init():
        acc_ref[...] = jnp.zeros_like(acc_ref)

    h = jnp.dot(x_ref[...], w1_ref[...], preferred_element_type=jnp.float32)
    h = h + b1_ref[...].astype(jnp.float32)
    if activation == "gelu":
        h = _gelu_tanh(h)
    acc_ref[...] += jnp.dot(h.astype(w2_ref.dtype), w2_ref[...],
                            preferred_element_type=jnp.float32)

    @pl.when(j == pl.num_programs(1) - 1)
    def _finalize():
        o_ref[...] = (acc_ref[...]
                      + b2_ref[...].astype(jnp.float32)).astype(o_ref.dtype)


# ------------------------------ host wrapper --------------------------------


def fused_mlp_pallas(x2, w1, b1, w2, b2, *, out_dtype, tm=512, th=1024,
                     activation="gelu"):
    """y = act(x2 @ w1 + b1) @ w2 + b2, fully fused (hidden stays in VMEM).

    x2: (M, D), w1: (D, H), b1: (1, H) or (H,), w2: (H, N), b2: (1, N) or (N,).
    """
    M, D = x2.shape
    D1, H = w1.shape
    H2, N = w2.shape
    assert D == D1 and H == H2, (x2.shape, w1.shape, w2.shape)
    out_dtype = jnp.dtype(out_dtype)

    b1 = b1.reshape(1, H)
    b2 = b2.reshape(1, N)

    # Sublane granule matches the compute dtype packing (8 f32 / 16 bf16).
    granule = 16 if x2.dtype == jnp.bfloat16 else 8
    tm, m_pad = _choose_m_tiling(M, tm, granule)
    if m_pad != M:
        x2 = jnp.pad(x2, ((0, m_pad - M), (0, 0)))
    th = _tile_size(H, th, 128)
    grid = (m_pad // tm, H // th)
    grid_m, grid_h = grid

    itemsize_c = x2.dtype.itemsize
    itemsize_o = out_dtype.itemsize

    # Block footprint (double-buffered inputs/outputs + accumulator); used to
    # set an explicit VMEM limit, capped so it is safe on v5e/v6e/v7x.
    vmem_est = (2 * (tm * D + D * th + th * N) * itemsize_c
                + 2 * tm * N * itemsize_o
                + (tm * N * 4 if grid_h > 1 else 0)
                + 2 * (th + N) * 4)
    vmem_limit = int(min(48 * 1024 * 1024,
                         max(32 * 1024 * 1024, 2 * vmem_est)))

    cost = pl.CostEstimate(
        flops=2 * m_pad * H * (D + N),
        transcendentals=m_pad * H if activation == "gelu" else 0,
        bytes_accessed=int(m_pad * D * itemsize_c
                           + grid_m * (D * H + H * N) * itemsize_c
                           + m_pad * N * itemsize_o
                           + (H + N) * 4),
    )

    if grid_h > 1:
        kernel = functools.partial(_fused_mlp_kernel_acc, activation=activation)
        scratch_shapes = [pltpu.VMEM((tm, N), jnp.float32)]
    else:
        kernel = functools.partial(_fused_mlp_kernel_single,
                                   activation=activation)
        scratch_shapes = []

    out = pl.pallas_call(
        kernel,
        out_shape=jax.ShapeDtypeStruct((m_pad, N), out_dtype),
        grid=grid,
        in_specs=[
            pl.BlockSpec((tm, D), lambda i, j: (i, 0)),   # x tile
            pl.BlockSpec((D, th), lambda i, j: (0, j)),   # W1 column slab
            pl.BlockSpec((1, th), lambda i, j: (0, j)),   # b1 slice
            pl.BlockSpec((th, N), lambda i, j: (j, 0)),   # W2 row slab
            pl.BlockSpec((1, N), lambda i, j: (0, 0)),    # b2
        ],
        out_specs=pl.BlockSpec((tm, N), lambda i, j: (i, 0)),
        scratch_shapes=scratch_shapes,
        compiler_params=pltpu.CompilerParams(
            dimension_semantics=("parallel", "arbitrary"),
            vmem_limit_bytes=vmem_limit,
        ),
        cost_estimate=cost,
    )(x2, w1, b1, w2, b2)

    return out[:M] if m_pad != M else out


# --------------------------------- module ------------------------------------


class MlpPallas:
    """JAX/Pallas re-implementation of the PyTorch Mlp module (forward only)."""

    def __init__(self, in_features, hidden_features=None, out_features=None,
                 drop=0.0, key=None, compute_dtype=jnp.bfloat16,
                 tm=512, th=1024):
        self.in_features = in_features
        self.hidden_features = hidden_features or in_features
        self.out_features = out_features or in_features
        self.compute_dtype = jnp.dtype(compute_dtype)
        self.tm = tm
        self.th = th

        if drop != 0.0:
            # TODO(synk): dropout with p>0 would need pltpu.prng_* masking in
            # the kernel epilogue; only the p=0 (identity) path is implemented.
            raise NotImplementedError("MlpPallas only supports drop=0.0")

        key = key if key is not None else jax.random.PRNGKey(0)
        k1, k2 = jax.random.split(key, 2)

        # trunc_normal_(std=0.02) (truncation at +-2 sigma), bias = 0.
        std = 0.02
        w1 = jax.random.truncated_normal(
            k1, -2.0, 2.0, (in_features, self.hidden_features), jnp.float32) * std
        w2 = jax.random.truncated_normal(
            k2, -2.0, 2.0, (self.hidden_features, self.out_features),
            jnp.float32) * std
        # Weights stored pre-cast to the compute dtype: no per-forward cast.
        self.w1 = w1.astype(self.compute_dtype)
        self.w2 = w2.astype(self.compute_dtype)
        self.b1 = jnp.zeros((1, self.hidden_features), jnp.float32)
        self.b2 = jnp.zeros((1, self.out_features), jnp.float32)

    def __call__(self, x):
        lead = x.shape[:-1]
        assert x.shape[-1] == self.in_features
        x2 = x.reshape(-1, self.in_features).astype(self.compute_dtype)
        y = fused_mlp_pallas(x2, self.w1, self.b1, self.w2, self.b2,
                             out_dtype=x.dtype, tm=self.tm, th=self.th,
                             activation="gelu")
        return y.reshape(*lead, self.out_features)


# ----------------------------- reference check -------------------------------


def _reference_forward(m: MlpPallas, x):
    x2 = (x.reshape(-1, m.in_features)
           .astype(m.compute_dtype).astype(jnp.float32))
    w1 = m.w1.astype(jnp.float32)
    w2 = m.w2.astype(jnp.float32)
    h = _gelu_tanh(x2 @ w1 + m.b1)
    y = h @ w2 + m.b2
    return y.reshape(*x.shape[:-1], m.out_features).astype(x.dtype)


if __name__ == "__main__":
    # Small, module-consistent shapes: batch=2, tokens=8, in=32, hidden=128.
    B, T, DIM, HIDDEN = 2, 8, 32, 128

    key = jax.random.PRNGKey(0)
    kx, kp = jax.random.split(key)
    x = jax.random.normal(kx, (B, T, DIM), jnp.float32)

    # f32 compute path (tight tolerance), single hidden block (no reduction).
    mlp_f32 = MlpPallas(DIM, hidden_features=HIDDEN, key=kp,
                        compute_dtype=jnp.float32)
    y = jax.block_until_ready(mlp_f32(x))
    y_ref = _reference_forward(mlp_f32, x)
    assert y.shape == (B, T, DIM), y.shape
    assert jnp.allclose(y, y_ref, atol=1e-4, rtol=1e-4), \
        "f32 mismatch vs reference"

    # Default path: bf16 operands / f32 accumulate (looser tolerance).
    mlp_bf16 = MlpPallas(DIM, hidden_features=HIDDEN, key=kp)
    y16 = jax.block_until_ready(mlp_bf16(x))
    y16_ref = _reference_forward(mlp_bf16, x)
    assert y16.shape == (B, T, DIM), y16.shape
    assert jnp.allclose(y16.astype(jnp.float32),
                        y16_ref.astype(jnp.float32),
                        atol=2e-2, rtol=2e-2), "bf16 mismatch vs reference"

    # Exercise the hidden-dim reduction path (grid_h > 1) and unaligned-M
    # padding (M = 3*7 = 21 tokens).
    mlp_red = MlpPallas(DIM, hidden_features=256, key=kp,
                        compute_dtype=jnp.float32, tm=8, th=128)
    x_odd = jax.random.normal(kx, (3, 7, DIM), jnp.float32)
    y_red = jax.block_until_ready(mlp_red(x_odd))
    y_red_ref = _reference_forward(mlp_red, x_odd)
    assert y_red.shape == (3, 7, DIM), y_red.shape
    assert jnp.allclose(y_red, y_red_ref, atol=1e-4, rtol=1e-4), \
        "reduction-path mismatch vs reference"

    print("KERNEL_OK")
</pallas_src>

<mosaic_0001>
module attributes {stable_mosaic.version = 11 : i64} {
  func.func @_fused_mlp_kernel_single(%arg0: i32, %arg1: i32, %arg2: memref<8x32xf32, #tpu.memory_space<vmem>>, %arg3: memref<32x128xf32, #tpu.memory_space<vmem>>, %arg4: memref<1x128xf32, #tpu.memory_space<vmem>>, %arg5: memref<128x32xf32, #tpu.memory_space<vmem>>, %arg6: memref<1x32xf32, #tpu.memory_space<vmem>>, %arg7: memref<8x32xf32, #tpu.memory_space<vmem>>) attributes {dimension_semantics = [#tpu.dimension_semantics<parallel>, #tpu.dimension_semantics<arbitrary>], iteration_bounds = array<i64: 2, 1>, scalar_prefetch = 0 : i64, scratch_operands = 0 : i64, tpu.core_type = #tpu.core_type<tc>, window_params = [{transform_indices = @transform_0, window_bounds = array<i64: 8, 32>}, {transform_indices = @transform_1, window_bounds = array<i64: 32, 128>}, {transform_indices = @transform_2, window_bounds = array<i64: 1, 128>}, {transform_indices = @transform_3, window_bounds = array<i64: 128, 32>}, {pipeline_mode = #tpu.pipeline_mode<synchronous>, transform_indices = @transform_4, window_bounds = array<i64: 1, 32>}, {transform_indices = @transform_5, window_bounds = array<i64: 8, 32>}]} {
    %c0 = arith.constant 0 : index
    %c0_0 = arith.constant 0 : index
    %0 = vector.load %arg2[%c0, %c0_0] : memref<8x32xf32, #tpu.memory_space<vmem>>, vector<8x32xf32>
    %c0_1 = arith.constant 0 : index
    %c0_2 = arith.constant 0 : index
    %1 = vector.load %arg3[%c0_1, %c0_2] : memref<32x128xf32, #tpu.memory_space<vmem>>, vector<32x128xf32>
    %cst = arith.constant dense<0.000000e+00> : vector<8x128xf32>
    %2 = tpu.matmul %0, %1, %cst {dimension_numbers = #tpu.dot_dimension_numbers<[1], [0], [0], [1], [0, 0, 1, 1], [], []>} : vector<8x32xf32>, vector<32x128xf32>, vector<8x128xf32> -> vector<8x128xf32>
    %c0_3 = arith.constant 0 : index
    %c0_4 = arith.constant 0 : index
    %3 = vector.load %arg4[%c0_3, %c0_4] : memref<1x128xf32, #tpu.memory_space<vmem>>, vector<1x128xf32>
    %4 = vector.broadcast %3 : vector<1x128xf32> to vector<8x128xf32>
    %5 = arith.addf %2, %4 : vector<8x128xf32>
    %cst_5 = arith.constant 5.000000e-01 : f32
    %6 = vector.broadcast %cst_5 : f32 to vector<8x128xf32>
    %7 = arith.mulf %6, %5 : vector<8x128xf32>
    %cst_6 = arith.constant 4.471500e-02 : f32
    %8 = vector.broadcast %cst_6 : f32 to vector<8x128xf32>
    %9 = arith.mulf %8, %5 : vector<8x128xf32>
    %10 = arith.mulf %9, %5 : vector<8x128xf32>
    %11 = arith.mulf %10, %5 : vector<8x128xf32>
    %12 = arith.addf %5, %11 : vector<8x128xf32>
    %cst_7 = arith.constant 0.797884583 : f32
    %13 = vector.broadcast %cst_7 : f32 to vector<8x128xf32>
    %14 = arith.mulf %13, %12 : vector<8x128xf32>
    %15 = math.tanh %14 : vector<8x128xf32>
    %cst_8 = arith.constant 1.000000e+00 : f32
    %16 = vector.broadcast %cst_8 : f32 to vector<8x128xf32>
    %17 = arith.addf %16, %15 : vector<8x128xf32>
    %18 = arith.mulf %7, %17 : vector<8x128xf32>
    %c0_9 = arith.constant 0 : index
    %c0_10 = arith.constant 0 : index
    %19 = vector.load %arg5[%c0_9, %c0_10] : memref<128x32xf32, #tpu.memory_space<vmem>>, vector<128x32xf32>
    %cst_11 = arith.constant dense<0.000000e+00> : vector<8x32xf32>
    %20 = tpu.matmul %18, %19, %cst_11 {dimension_numbers = #tpu.dot_dimension_numbers<[1], [0], [0], [1], [0, 0, 1, 1], [], []>} : vector<8x128xf32>, vector<128x32xf32>, vector<8x32xf32> -> vector<8x32xf32>
    %c0_12 = arith.constant 0 : index
    %c0_13 = arith.constant 0 : index
    %21 = vector.load %arg6[%c0_12, %c0_13] : memref<1x32xf32, #tpu.memory_space<vmem>>, vector<1x32xf32>
    %22 = vector.broadcast %21 : vector<1x32xf32> to vector<8x32xf32>
    %23 = arith.addf %20, %22 : vector<8x32xf32>
    %c0_14 = arith.constant 0 : index
    %c0_15 = arith.constant 0 : index
    %24 = vector.load %arg7[%c0_14, %c0_15] : memref<8x32xf32, #tpu.memory_space<vmem>>, vector<8x32xf32>
    tpu.vector_store %arg7[%c0_14, %c0_15], %23 {strides = array<i32>} : memref<8x32xf32, #tpu.memory_space<vmem>>, vector<8x32xf32>,
    return
  }
  func.func @transform_0(%arg0: i32, %arg1: i32) -> (i32, i32) {
    %c0_i32 = arith.constant 0 : i32
    %c0_i32_0 = arith.constant 0 : i32
    return %arg0, %c0_i32 : i32, i32
  }
  func.func @transform_1(%arg0: i32, %arg1: i32) -> (i32, i32) {
    %c0_i32 = arith.constant 0 : i32
    %c0_i32_0 = arith.constant 0 : i32
    return %c0_i32, %arg1 : i32, i32
  }
  func.func @transform_2(%arg0: i32, %arg1: i32) -> (i32, i32) {
    %c0_i32 = arith.constant 0 : i32
    %c0_i32_0 = arith.constant 0 : i32
    return %c0_i32, %arg1 : i32, i32
  }
  func.func @transform_3(%arg0: i32, %arg1: i32) -> (i32, i32) {
    %c0_i32 = arith.constant 0 : i32
    %c0_i32_0 = arith.constant 0 : i32
    return %arg1, %c0_i32 : i32, i32
  }
  func.func @transform_4(%arg0: i32, %arg1: i32) -> (i32, i32) {
    %c0_i32 = arith.constant 0 : i32
    %c0_i32_0 = arith.constant 0 : i32
    %c0_i32_1 = arith.constant 0 : i32
    return %c0_i32, %c0_i32_0 : i32, i32
  }
  func.func @transform_5(%arg0: i32, %arg1: i32) -> (i32, i32) {
    %c0_i32 = arith.constant 0 : i32
    %c0_i32_0 = arith.constant 0 : i32
    return %arg0, %c0_i32 : i32, i32
  }
}

</mosaic_0001>

<bundles_post_ra>
// kernel: tpu_custom_call.1
= control target key start
LH: loop header
LB: loop body
LE: loop exit
PB: predicated region body
PF: predicated region fallthrough
CT: control target
= control target key end

     0   :  { %10 = vsyncpa [#allocation3], 0  ;;  %s1047_s0 = inlined_call_operand.vmem [shape: f32[16,32], index: 0, kind: input, shape index: {}]   ;;  %s1048_s1 = inlined_call_operand.vmem [shape: f32[32,128], index: 1, kind: input, shape index: {}]   ;;  %s1049_s2 = inlined_call_operand.vmem [shape: f32[1,128], index: 2, kind: input, shape index: {}]   ;;  %s1050_s3 = inlined_call_operand.vmem [shape: f32[128,32], index: 3, kind: input, shape index: {}]   ;;  %s1051_s4 = inlined_call_operand.vmem [shape: f32[1,32], index: 4, kind: input, shape index: {}]   ;;  %s1052_s5 = inlined_call_operand.hbm [shape: f32[16,32], index: 5, kind: output, shape index: {}]  }
   0x1   :  { %12 = vsyncpa [#allocation3 + $0x1], 0  ;;  %s852_s18 = smov 0   ;;  %s854_s19 = smov 0  }
   0x2   :  { %s856_s20 = smov 0   ;;  %s858_s21 = smov 0  }
   0x3   :  { %s860_s22 = smov 0   ;;  %s862_s23 = smov 0  }
   0x4 LB: > { %s597_s24 = sadd.s32 4294967295, %s817_s23   ;;  %s598_s25 = sadd.s32 4294967294, %s817_s23   ;;  %s817_s23 = sphi %s862_s23, %s18_s23   ;;  %s813_s22 = sphi %s860_s22, %s1059_s22   ;;  %s809_s21 = sphi %s858_s21, %s1058_s21   ;;  %s805_s20 = sphi %s856_s20, %s1057_s20   ;;  %s801_s19 = sphi %s854_s19, %s1056_s19   ;;  %s797_s18 = sphi %s852_s18, %s1055_s18  }
   0x5   : > { %s30_s26 = sadd.s32 1, %s813_s22  ;;  %s162_s27 = sadd.s32 1, %s805_s20 }
   0x6   : > { %p32_p0 = scmp.ge.s32.totalorder %s30_s26, 2  ;;  %p172_p1 = scmp.ne.s32.totalorder %s805_s20, %s801_s19 }
   0x7   : > { %p173_p2 = scmp.eq.s32.totalorder %s597_s24, 1  ;;  %p178_p3 = scmp.ne.s32.totalorder %s801_s19, %s797_s18 }
   0x8   : > { %s1061_s26 = smov (%p32_p0, %s30_s26), 0  ;;  %p179_p5 = scmp.eq.s32.totalorder %s598_s25, 1 }
   0x9   : > { %p892_p4 = por %p173_p2, %p172_p1  ;;  %s159_s29 = ssub.s32 %s813_s22, %s1061_s26 }
   0xa   : > { %p604_p6 = scmp.ge.s32.totalorder %s817_s23, 1  ;;  %p160_p7 = scmp.eq.s32.totalorder %s159_s29, 0 }
   0xb   : > { %p899_p8 = por %p179_p5, %p178_p3  ;;  %p229_p9 = scmp.lt.s32.totalorder %s817_s23, 3 }
   0xc   : > { %s905_s6 = scalar_select %p160_p7, %s805_s20, %s162_s27  }
   0xd   : > { %p230_p10 = pnand %p604_p6, %p229_p9 }
   0xe   : > { %p268_p11 = scmp.lt.s32.totalorder (!%p230_p10), %s809_s21, 1  ;;  %s265_s9 = sand.u32 (!%p230_p10), 1, %s801_s19  }
   0xf   : > { %233 = sbr.rel (%p230_p10) target bundleno = 460 (0x1cc), region = 40  ;;  %s605_s10 = sshll.u32 (!%p230_p10), %s265_s9, 3 }
  0x10   : > { %s611_s13 = sshll.u32 (!%p230_p10), %s809_s21, 7 }
  0x11   : > { %s1006_s24 = scalar_lea.hbm (!%p230_p10), %s1052_s5, %s611_s13 }
  0x14   : > { %v289_v0 = vld [vmem:[%s1048_s1 + $0x18] sm:$0xff]  ;;  %v819_v1 = vmov 0.0   ;;  %v288_v2 = vld [vmem:[%s1048_s1 + $0x10] sm:$0xff]  ;;  %vm820_vm0 = vmmov 0   ;;  %s269_s11 = scalar_select %p268_p11, %s809_s21, 1  ;;  %v287_v3 = vld [vmem:[%s1048_s1 + $0x8] sm:$0xff] }
  0x15   : > { %636 = vmatprep.subr.mxu0 %v819_v1  ;;  %644 = vmatprep.mubr.msk.f32.mxu0 %vm820_vm0, %v819_v1  ;;  %v286_v4 = vld [vmem:[%s1048_s1] sm:$0xff]  ;;  %vm297_vm1 = vcmask 261120   ;;  %v395_v6 = vld [vmem:[%s1050_s3 + $0x78] sm:$0xff]  ;;  %v394_v7 = vld [vmem:[%s1050_s3 + $0x70] sm:$0xff]  ;;  %s821_s21 = smov [#allocation2]  }
  0x16   : > { %637 = vmatpush3.msra.mxu0 %v289_v0  ;;  %647 = vmatprep.subr.mxu1 %v819_v1  ;;  %s606_s14 = sshll.u32 %s269_s11, 3  ;;  %v393_v8 = vld [vmem:[%s1050_s3 + $0x68] sm:$0xff]  ;;  %v392_v9 = vld [vmem:[%s1050_s3 + $0x60] sm:$0xff]  ;;  %v391_v10 = vld [vmem:[%s1050_s3 + $0x58] sm:$0xff]  ;;  %s745_s29 = sshll.u32 %s821_s21, 4  ;;  %s746_s29 = int_to_ptr.vmem [resolvable:$false] %s745_s29 }
  0x17   : > { %638 = vmatprep.subr.mxu0 %v819_v1  ;;  %679 = vmatprep.mubr.msk.f32.mxu1 %vm820_vm0, %v819_v1  ;;  %s271_s25 = scalar_lea.vmem %s1047_s0, %s606_s14  ;;  %v390_v11 = vld [vmem:[%s1050_s3 + $0x50] sm:$0xff]  ;;  %v389_v12 = vld [vmem:[%s1050_s3 + $0x48] sm:$0xff]  ;;  %v388_v13 = vld [vmem:[%s1050_s3 + $0x40] sm:$0xff]  ;;  %s267_s14 = scalar_lea.vmem [#allocation2], %s605_s10 }
  0x18   : > { %639 = vmatpush3.msra.mxu0 %v288_v2  ;;  %v285_v5 = vld [vmem:[%s271_s25] sm:$0xff]  ;;  %648 = vmatpush3.msra.mxu1 %v395_v6  ;;  %v387_v14 = vld [vmem:[%s1050_s3 + $0x38] sm:$0xff]  ;;  %v386_v15 = vld [vmem:[%s1050_s3 + $0x30] sm:$0xff]  ;;  %s488_s15 = sshll.u32 %s267_s14, 4  ;;  %s475_s25 = scalar_lea.sflag [#allocation3], %s265_s9  ;;  %s489_s15 = int_to_ptr.vmem [resolvable:$true] %s488_s15 }
  0x19   : > { %640 = vmatprep.subr.mxu0 %v819_v1  ;;  %649 = vmatprep.subr.mxu1 %v819_v1  ;;  %v385_v16 = vld [vmem:[%s1050_s3 + $0x28] sm:$0xff]  ;;  %v384_v17 = vld [vmem:[%s1050_s3 + $0x20] sm:$0xff]  ;;  %v383_v18 = vld [vmem:[%s1050_s3 + $0x18] sm:$0xff]  ;;  %s741_s27 = scalar_lea.vmem %s489_s15, 128  ;;  %s747_s7 = scalar_lea.vmem %s746_s29, 256 }
  0x1a   : > { %641 = vmatpush3.msra.mxu0 %v287_v3  ;;  %650 = vmatpush3.msra.mxu1 %v394_v7  ;;  %v382_v19 = vld [vmem:[%s1050_s3 + $0x10] sm:$0xff]  ;;  %v381_v20 = vld [vmem:[%s1050_s3 + $0x8] sm:$0xff]  ;;  %v380_v21 = vld [vmem:[%s1050_s3] sm:$0xff]  ;;  %p742_p12 = scmp.ne.s32.totalorder %s489_s15, %s741_s27  ;;  %p748_p1 = scmp.lt.s32.totalorder %s489_s15, %s746_s29 }
  0x1b   : > { %642 = vmatprep.subr.mxu0 %v819_v1  ;;  %651 = vmatprep.subr.mxu1 %v819_v1  ;;  %v607_v22 = vld [vmem:[%s1049_s2] ss:$0 sm:$0xff]  ;;  %p749_p2 = scmp.lt.s32.totalorder %s747_s7, %s741_s27 }
  0x1c   : > { %643 = vmatpush3.msra.mxu0 %v286_v4  ;;  %652 = vmatpush3.msra.mxu1 %v393_v8  ;;  %v609_v35 = vld [vmem:[%s1051_s4] ss:$0 sm:$0xff]  ;;  %p743_p13 = pnand %p742_p12, %p892_p4 }
  0x1d   : > { %645 = vmatmul.mubr.msk.f32.vlgmr.msra.gmra.mxu0 %vm297_vm1, %v285_v5  ;;  %653 = vmatprep.subr.mxu1 %v819_v1  ;;  %p750_p3 = por %p749_p2, %p748_p1 }
  0x1e   : > { %654 = vmatpush3.msra.mxu1 %v392_v9  ;;  %p744_p0 = pneg %p743_p13 }
  0x1f   : > { %655 = vmatprep.subr.mxu1 %v819_v1 }
  0x20   : > { %656 = vmatpush3.msra.mxu1 %v391_v10  ;;  %p751_p5 = pnand %p750_p3, %p744_p0 }
  0x21   : > { %657 = vmatprep.subr.mxu1 %v819_v1 }
  0x22   : > { %658 = vmatpush3.msra.mxu1 %v390_v11 }
  0x23   : > { %659 = vmatprep.subr.mxu1 %v819_v1 }
  0x24   : > { %660 = vmatpush3.msra.mxu1 %v389_v12 }
  0x25   : > { %661 = vmatprep.subr.mxu1 %v819_v1 }
  0x26   : > { %662 = vmatpush3.msra.mxu1 %v388_v13 }
  0x27   : > { %663 = vmatprep.subr.mxu1 %v819_v1 }
  0x28   : > { %664 = vmatpush3.msra.mxu1 %v387_v14 }
  0x29   : > { %665 = vmatprep.subr.mxu1 %v819_v1 }
  0x2a   : > { %666 = vmatpush3.msra.mxu1 %v386_v15 }
  0x2b   : > { %667 = vmatprep.subr.mxu1 %v819_v1 }
  0x2c   : > { %668 = vmatpush3.msra.mxu1 %v385_v16 }
  0x2d   : > { %669 = vmatprep.subr.mxu1 %v819_v1 }
  0x2e   : > { %670 = vmatpush3.msra.mxu1 %v384_v17 }
  0x2f   : > { %671 = vmatprep.subr.mxu1 %v819_v1 }
  0x30   : > { %672 = vmatpush3.msra.mxu1 %v383_v18 }
  0x31   : > { %673 = vmatprep.subr.mxu1 %v819_v1 }
  0x32   : > { %674 = vmatpush3.msra.mxu1 %v382_v19 }
  0x33   : > { %675 = vmatprep.subr.mxu1 %v819_v1 }
  0x34   : > { %676 = vmatpush3.msra.mxu1 %v381_v20 }
  0x35   : > { %677 = vmatprep.subr.mxu1 %v819_v1 }
  0x36   : > { %678 = vmatpush3.msra.mxu1 %v380_v21 }
  0xdd   : > { %v367_v23 = vpop.f32.mrf.mxu0 }
  0xde   : > { %v368_v24 = vadd.f32 %v607_v22, %v367_v23 }
  0xdf   : > { %v646_v25 = vpop.f32.mrf.mxu0 }
  0xe0   : > { %v372_v26 = vmul.f32 0.044715, %v368_v24  ;;  %v371_v32 = vmul.f32 0.5, %v368_v24 }
  0xe2   : > { %v373_v27 = vmul.f32 %v372_v26, %v368_v24 }
  0xe4   : > { %v374_v28 = vmul.f32 %v373_v27, %v368_v24 }
  0xe6   : > { %v375_v29 = vadd.f32 %v374_v28, %v368_v24 }
  0xe8   : > { %v376_v30 = vmul.f32 0.7978846, %v375_v29 }
  0xea   : > { %739 = vtanh.f32 %v376_v30 }
  0xf7   : > { %v740_v31 = vpop.eup %739 }
  0xf8   : > { %v378_v33 = vadd.f32 1.0, %v740_v31 }
  0xfa   : > { %v379_v34 = vmul.f32 %v378_v33, %v371_v32 }
  0xfc   : > { %680 = vmatmul.mubr.f32.vlgmr.msra.gmra.mxu1 %v379_v34 }
 0x1bc   : > { %v469_v36 = vpop.f32.mrf.mxu1 }
 0x1bd   : > { %v470_v37 = vadd.f32 %v609_v35, %v469_v36 }
 0x1be   : > { %v681_v38 = vpop.f32.mrf.mxu1 }
 0x1bf   : > { %473 = vst.msk [vmem:[%s267_s14] sm:$0xff] %vm297_vm1, %v470_v37 }
 0x1c0   : > { %754 = shalt.err (!%p751_p5)
}
 0x1c1   : > { %s755_s8 = scalar_lea.hbm %s1006_s24, 128  ;;  %s759_s11 = scalar_lea.hbm %s1052_s5, 256 }
 0x1c2   : > { %p756_p6 = scmp.ne.s32.totalorder %s1006_s24, %s755_s8  ;;  %p760_p10 = scmp.lt.s32.totalorder %s1006_s24, %s1052_s5 }
 0x1c3   : > { %p761_p11 = scmp.lt.s32.totalorder %s759_s11, %s755_s8 }
 0x1c4   : > { %p757_p7 = pnand %p756_p6, %p892_p4 }
 0x1c5   : > { %p762_p12 = por %p761_p11, %p760_p10 }
 0x1c6   : > { %p758_p9 = pneg %p757_p7 }
 0x1c8   : > { %p763_p13 = pnand %p762_p12, %p758_p9 }
 0x1ca   : > { %766 = shalt.err (!%p763_p13)
}
 0x1cb   : > { %682 = dma.vmem_to_hbm [thread:$0]  (%p892_p4), %s489_s15, 128, %s1006_s24, %s475_s25  }
 0x1cc PF: > { %p688_p0 = scmp.ge.s32.totalorder %s817_s23, 2  ;;  %s500_s14 = sand.u32 1, %s797_s18  }
 0x1cd   : > { %s501_s16 = scalar_lea.sflag [#allocation3], %s500_s14 }
 0x1ce   : > { %p685_p1 = pnand %p688_p0, %p899_p8 }
 0x1d0   : > { %p686_p2 = pneg %p685_p1 }
 0x1d2   : > { %792 = dma.done.wait (%p686_p2), %s501_s16, 128  }
 0x1d3   : > { %794 = vsyncadd (%p686_p2), %s501_s16, 4294967168  ;;  %s18_s23 = sadd.s32 1, %s817_s23   ;;  %s1055_s18 = smov %s801_s19 }
 0x1d4   : > { %p15_p3 = scmp.ge.s32.totalorder %s18_s23, 4   ;;  %s1056_s19 = smov %s805_s20 }
 0x1d5   : > { %s1057_s20 = smov %s905_s6  ;;  %s1058_s21 = smov %s813_s22 }
 0x1d6   : > { %s1059_s22 = smov %s1061_s26  ;;  %17 = sbr.rel (!%p15_p3) target bundleno = 4 (0x4), region = 84 }
 0x1db   :  { %506 = vsyncpa [#allocation3], 1 }
 0x1dc   :  { %508 = vsyncpa [#allocation3 + $0x1], 1 }

</bundles_post_ra>
